<compile_context>
chip_gen: v7x
topology: tpu7x:2x2x1
jax: 0.10.0
libtpu: 0.0.40
codegen_flags: <defaults>
</compile_context>

<pallas_src>
import jax
import jax.numpy as jnp
from jax.experimental import pallas as pl
from jax.experimental.pallas import tpu as pltpu


_MIN_SPLIT_BYTES = 2 * 1024 * 1024      # force >=2 row-blocks above this size
_TARGET_BLOCK_BYTES = 8 * 1024 * 1024   # ~8 MiB per buffer on all generations


def _linreg_kernel(w_ref, b_ref, x_ref, o_ref):
    # w_ref / b_ref are (1,) f32 scalars in SMEM; x_ref / o_ref are VMEM tiles.
    w = w_ref[0].astype(x_ref.dtype)
    b = b_ref[0].astype(x_ref.dtype)
    o_ref[...] = w * x_ref[...] + b


def _round_down(v: int, m: int) -> int:
    return max((v // m) * m, m)


def _vmem_budget():
    """(target_block_bytes, vmem_limit_bytes) sized against this chip's VMEM."""
    cap = 64 * 1024 * 1024  # conservative fallback = v7x physical VMEM
    try:
        cap = int(pltpu.get_tpu_info().vmem_capacity_bytes)
    except Exception:
        pass
    # 2 live buffers (x, out) x double-buffered x 8 MiB = 32 MiB peak.
    if cap >= 96 * 1024 * 1024:           # v5e / v6e: 128 MiB VMEM
        vmem_limit = 64 * 1024 * 1024
    else:                                 # v7x: 64 MiB VMEM
        vmem_limit = 48 * 1024 * 1024
    return _TARGET_BLOCK_BYTES, vmem_limit


def _pick_lanes(total_elems: int) -> int:
    """Lane width (multiple of 128) for the flattened slab; fills sublanes when big."""
    for lanes in (1024, 512, 256, 128):
        if total_elems >= lanes * 8:
            return lanes
    return 128


def _choose_tiles(N: int, D: int, itemsize: int, target_block_bytes: int):
    """Largest lane-dense (tile_n, tile_d) with tile bytes <= target_block_bytes."""
    # Sublane packing multiple: 8 rows f32, 16 bf16, 32 int8/fp8.
    row_mult = 8 * max(1, 4 // itemsize)

    # Prefer full-D rows (contiguous block DMA); tile D only as a last resort.
    if D <= 128 or D * itemsize * row_mult <= target_block_bytes:
        tile_d = D
    else:
        tile_d = min(_round_down(target_block_bytes // (row_mult * itemsize), 128), D)

    budget_rows = _round_down(target_block_bytes // (tile_d * itemsize), row_mult)
    tile_n = min(budget_rows, N)

    # Guarantee >=2 blocks along the parallel row axis for mid-sized inputs so
    # both v7x TensorCores are used.  One extra ~0.35us step on 1-TC chips.
    total_bytes = N * D * itemsize
    if (tile_n >= N and tile_d >= D and total_bytes > _MIN_SPLIT_BYTES
            and N >= 2 * row_mult):
        half = pl.cdiv(N, 2)
        tile_n = min(row_mult * pl.cdiv(half, row_mult), budget_rows)

    return tile_n, tile_d


def linear_regression_forward(x: jax.Array, weight: jax.Array, bias: jax.Array,
                              donate_x: bool = False) -> jax.Array:
    """Elementwise y = weight * x + bias via a Pallas TPU kernel.

    x: array of any shape/float dtype.  weight, bias: shape-(1,) parameters
    (matching nn.Parameter(torch.randn(1))).  Set donate_x=True to alias the
    input buffer into the output when x is dead after the call.
    """
    orig_shape = x.shape
    itemsize = jnp.dtype(x.dtype).itemsize
    weight = jnp.asarray(weight, jnp.float32).reshape(1)
    bias = jnp.asarray(bias, jnp.float32).reshape(1)

    # Build a lane-dense 2-D slab view of x.
    pad = 0
    total = x.size
    if x.ndim >= 2 and x.shape[-1] >= 128 and x.shape[-1] % 128 == 0:
        x2 = x.reshape(-1, x.shape[-1])
    else:
        lanes = _pick_lanes(total)
        flat = x.reshape(-1)
        pad = (-total) % lanes
        if pad:
            flat = jnp.pad(flat, (0, pad))
        x2 = flat.reshape(-1, lanes)
    N, D = x2.shape

    target_block_bytes, vmem_limit_bytes = _vmem_budget()
    tile_n, tile_d = _choose_tiles(N, D, itemsize, target_block_bytes)
    grid = (pl.cdiv(N, tile_n), pl.cdiv(D, tile_d))

    out = pl.pallas_call(
        _linreg_kernel,
        out_shape=jax.ShapeDtypeStruct((N, D), x2.dtype),
        grid_spec=pltpu.PrefetchScalarGridSpec(
            num_scalar_prefetch=0,
            grid=grid,
            in_specs=[
                pl.BlockSpec(memory_space=pltpu.SMEM),                 # weight (1,)
                pl.BlockSpec(memory_space=pltpu.SMEM),                 # bias   (1,)
                pl.BlockSpec((tile_n, tile_d), lambda i, j: (i, j)),   # x tile
            ],
            out_specs=pl.BlockSpec((tile_n, tile_d), lambda i, j: (i, j)),
        ),
        compiler_params=pltpu.CompilerParams(
            dimension_semantics=("parallel", "parallel"),
            vmem_limit_bytes=vmem_limit_bytes),
        cost_estimate=pl.CostEstimate(
            flops=2 * N * D,
            transcendentals=0,
            bytes_accessed=2 * N * D * itemsize),
        input_output_aliases=({2: 0} if donate_x else {}),
    )(weight, bias, x2)

    if pad:
        out = out.reshape(-1)[:total]
    return out.reshape(orig_shape)


if __name__ == "__main__":
    key = jax.random.PRNGKey(0)
    kw, kb, kx1, kx2 = jax.random.split(key, 4)

    # Parameter init consistent with nn.Parameter(torch.randn(1)).
    weight = jax.random.normal(kw, (1,), dtype=jnp.float32)
    bias = jax.random.normal(kb, (1,), dtype=jnp.float32)

    # Lane-aligned input path.
    x1 = jax.random.normal(kx1, (16, 128), dtype=jnp.float32)
    y1 = jax.block_until_ready(linear_regression_forward(x1, weight, bias))
    assert jnp.allclose(y1, weight[0] * x1 + bias[0], atol=1e-6, rtol=1e-6)

    # Ragged / non-128-aligned input exercising the flatten + pad lane-dense path.
    x2 = jax.random.normal(kx2, (2, 4, 50), dtype=jnp.float32)
    y2 = jax.block_until_ready(linear_regression_forward(x2, weight, bias))
    assert jnp.allclose(y2, weight[0] * x2 + bias[0], atol=1e-6, rtol=1e-6)

    print("KERNEL_OK")
</pallas_src>

<mosaic_0001>
module attributes {stable_mosaic.version = 11 : i64} {
  func.func @_linreg_kernel(%arg0: i32, %arg1: i32, %arg2: memref<1xf32, #tpu.memory_space<smem>>, %arg3: memref<1xf32, #tpu.memory_space<smem>>, %arg4: memref<16x128xf32, #tpu.memory_space<vmem>>, %arg5: memref<16x128xf32, #tpu.memory_space<vmem>>) attributes {dimension_semantics = [#tpu.dimension_semantics<parallel>, #tpu.dimension_semantics<parallel>], iteration_bounds = array<i64: 1, 1>, scalar_prefetch = 0 : i64, scratch_operands = 0 : i64, tpu.core_type = #tpu.core_type<tc>, window_params = [{transform_indices = @transform_0, window_bounds = array<i64: 1>}, {transform_indices = @transform_1, window_bounds = array<i64: 1>}, {transform_indices = @transform_2, window_bounds = array<i64: 16, 128>}, {transform_indices = @transform_3, window_bounds = array<i64: 16, 128>}]} {
    %c0 = arith.constant 0 : index
    %0 = memref.load %arg2[%c0] : memref<1xf32, #tpu.memory_space<smem>>
    %c0_0 = arith.constant 0 : index
    %1 = memref.load %arg3[%c0_0] : memref<1xf32, #tpu.memory_space<smem>>
    %c0_1 = arith.constant 0 : index
    %c0_2 = arith.constant 0 : index
    %2 = vector.load %arg4[%c0_1, %c0_2] : memref<16x128xf32, #tpu.memory_space<vmem>>, vector<16x128xf32>
    %3 = vector.broadcast %0 : f32 to vector<16x128xf32>
    %4 = arith.mulf %3, %2 : vector<16x128xf32>
    %5 = vector.broadcast %1 : f32 to vector<16x128xf32>
    %6 = arith.addf %4, %5 : vector<16x128xf32>
    %c0_3 = arith.constant 0 : index
    %c0_4 = arith.constant 0 : index
    %7 = vector.load %arg5[%c0_3, %c0_4] : memref<16x128xf32, #tpu.memory_space<vmem>>, vector<16x128xf32>
    tpu.vector_store %arg5[%c0_3, %c0_4], %6 {strides = array<i32>} : memref<16x128xf32, #tpu.memory_space<vmem>>, vector<16x128xf32>,
    return
  }
  func.func @transform_0(%arg0: i32, %arg1: i32) -> i32 {
    %c0_i32 = arith.constant 0 : i32
    %c0_i32_0 = arith.constant 0 : i32
    return %c0_i32 : i32
  }
  func.func @transform_1(%arg0: i32, %arg1: i32) -> i32 {
    %c0_i32 = arith.constant 0 : i32
    %c0_i32_0 = arith.constant 0 : i32
    return %c0_i32 : i32
  }
  func.func @transform_2(%arg0: i32, %arg1: i32) -> (i32, i32) {
    %c0_i32 = arith.constant 0 : i32
    return %arg0, %arg1 : i32, i32
  }
  func.func @transform_3(%arg0: i32, %arg1: i32) -> (i32, i32) {
    %c0_i32 = arith.constant 0 : i32
    return %arg0, %arg1 : i32, i32
  }
}

</mosaic_0001>

<bundles_post_ra>
// kernel: tpu_custom_call.1
= control target key start
LH: loop header
LB: loop body
LE: loop exit
PB: predicated region body
PF: predicated region fallthrough
CT: control target
= control target key end

     0   :  { %10 = vsyncpa [#allocation5], 0  ;;  %s172_s0 = inlined_call_operand.<no memory space> [shape: f32[1], index: 0, kind: input, shape index: {}]   ;;  %s173_s1 = inlined_call_operand.<no memory space> [shape: f32[1], index: 1, kind: input, shape index: {}]   ;;  %s174_s2 = inlined_call_operand.hbm [shape: f32[16,128], index: 2, kind: input, shape index: {}]   ;;  %s175_s3 = inlined_call_operand.hbm [shape: f32[16,128], index: 3, kind: output, shape index: {}]  }
   0x1   :  { %11 = vsyncpa [#allocation6], 0  ;;  %s112_s12 = smov [#allocation4]   ;;  %s64_s16 = scalar_lea.hbm %s174_s2, 256 }
   0x2   :  { %s21_s13 = sshll.u32 %s112_s12, 4  ;;  %p65_p0 = scmp.ne.s32.totalorder %s174_s2, %s64_s16  ;;  %s22_s13 = int_to_ptr.vmem [resolvable:$true] %s21_s13 }
   0x3   :  { %p68_p1 = scmp.lt.u32.totalorder %s64_s16, %s174_s2 }
   0x5   :  { %p70_p2 = pnand %p68_p1, %p65_p0 }
   0x7   :  { %73 = shalt.err (!%p70_p2)
}
   0x8   :  { %s74_s21 = scalar_lea.vmem %s22_s13, 256  ;;  %p79_p4 = scmp.lt.s32.totalorder %s22_s13, %s22_s13 }
   0x9   :  { %p75_p3 = scmp.ne.s32.totalorder %s22_s13, %s74_s21  ;;  %p80_p5 = scmp.lt.s32.totalorder %s74_s21, %s74_s21 }
   0xb   :  { %p81_p6 = por %p80_p5, %p79_p4 }
   0xd   :  { %p82_p7 = pnand %p81_p6, %p75_p3 }
   0xf   :  { %85 = shalt.err (!%p82_p7)
}
  0x10   :  { %s113_s22 = smov 128   ;;  %s114_s23 = smov 8  }
  0x11   :  { %27 = dma.hbm_to_vmem [thread:$0]  %s174_s2, 256, %s22_s13, [#allocation5], %s113_s22, %s113_s22, %s114_s23  }
  0x12   :  { %108 = dma.done.wait [#allocation5], 256  }
  0x13   :  { %109 = vsyncadd [#allocation5], 4294967040  ;;  %v35_v0 = vstv %s172_s0  ;;  %v33_v1 = vld [vmem:[#allocation4] sm:$0xff]  ;;  %v38_v2 = vstv %s173_s1  ;;  %v34_v3 = vld [vmem:[#allocation4 + $0x8] sm:$0xff]  ;;  %s115_s30 = smov [#allocation7]  }
  0x14   :  { %s48_s4 = sshll.u32 %s115_s30, 4  ;;  %v36_v4 = vmul.f32 %v35_v0, %v33_v1  ;;  %v37_v5 = vmul.f32 %v35_v0, %v34_v3  ;;  %s49_s4 = int_to_ptr.vmem [resolvable:$true] %s48_s4 }
  0x15   :  { %s86_s2 = scalar_lea.vmem %s49_s4, 256  ;;  %p91_p9 = scmp.lt.s32.totalorder %s49_s4, %s49_s4 }
  0x16   :  { %v39_v6 = vadd.f32 %v38_v2, %v36_v4  ;;  %v40_v7 = vadd.f32 %v38_v2, %v37_v5  ;;  %p87_p8 = scmp.ne.s32.totalorder %s49_s4, %s86_s2  ;;  %p92_p10 = scmp.lt.s32.totalorder %s86_s2, %s86_s2 }
  0x18   :  { %41 = vst [vmem:[#allocation7] sm:$0xff] %v39_v6  ;;  %42 = vst [vmem:[#allocation7 + $0x8] sm:$0xff] %v40_v7  ;;  %p93_p11 = por %p92_p10, %p91_p9 }
  0x1a   :  { %p94_p12 = pnand %p93_p11, %p87_p8 }
  0x1c   :  { %97 = shalt.err (!%p94_p12)
}
  0x1d   :  { %s98_s1 = scalar_lea.hbm %s175_s3, 256 }
  0x1e   :  { %p99_p13 = scmp.ne.s32.totalorder %s175_s3, %s98_s1  ;;  %p102_p0 = scmp.lt.u32.totalorder %s98_s1, %s175_s3 }
  0x20   :  { %p104_p1 = pnand %p102_p0, %p99_p13 }
  0x22   :  { %107 = shalt.err (!%p104_p1)
}
  0x23   :  { %54 = dma.vmem_to_hbm [thread:$0]  %s49_s4, 256, %s175_s3, [#allocation6], %s113_s22, %s113_s22, %s114_s23  }
  0x24   :  { %110 = dma.done.wait [#allocation6], 256  }
  0x25   :  { %111 = vsyncadd [#allocation6], 4294967040 }
  0x26   :  { %58 = vsyncpa [#allocation5], 1 }
  0x27   :  { %59 = vsyncpa [#allocation6], 1 }

</bundles_post_ra>
